<compile_context>
chip_gen: v7x
topology: tpu7x:2x2x1
jax: 0.10.0
libtpu: 0.0.40
codegen_flags: <defaults>
</compile_context>

<pallas_src>
import functools

import jax
import jax.numpy as jnp
from jax.experimental import pallas as pl
from jax.experimental.pallas import tpu as pltpu

PAD = 128          # lane-dense padded feature width for every layer
NUM_LAYERS = 4
LAYER_DIMS = lambda in_dim, out_dim: [(in_dim, 32), (32, 32), (32, 16), (16, out_dim)]


def mlp_kernel(x_ref, wp_ref, bp_ref, out_ref, *, in_dim):
    """x_ref: (BM, in_dim) f32; wp_ref: (4, 128, 128) bf16; bp_ref: (4, 128) f32;
    out_ref: (BM, 128) f32 (only the first out_dim columns are meaningful)."""
    x = x_ref[...]                                            # (BM, in_dim) f32

    # Layer 1: K = in_dim (tiny).  Slice the padded weight down to its valid rows.
    # (A VPU broadcast-MAC would also work here; the MXU dot is kept for simplicity.)
    w1 = wp_ref[0][:in_dim, :]                                # (in_dim, 128) bf16
    h = jnp.dot(x.astype(jnp.bfloat16), w1,
                preferred_element_type=jnp.float32) + bp_ref[0:1, :]
    h = jnp.maximum(h, 0.0)                                   # (BM, 128) f32

    # Layers 2..4: zero-padded to (128, 128) so K and N are lane-dense.
    for layer in range(1, NUM_LAYERS):
        h = jnp.dot(h.astype(jnp.bfloat16), wp_ref[layer],
                    preferred_element_type=jnp.float32) + bp_ref[layer:layer + 1, :]
        if layer < NUM_LAYERS - 1:
            h = jnp.maximum(h, 0.0)

    out_ref[...] = h                                          # lane-dense (BM, 128) store


def pack_params(params, in_dim, out_dim):
    """Pack the 4 weight matrices into one (4,128,128) bf16 array (zero padded)
    and the 4 biases into one (4,128) f32 array."""
    wp = jnp.zeros((NUM_LAYERS, PAD, PAD), jnp.float32)
    bp = jnp.zeros((NUM_LAYERS, PAD), jnp.float32)
    for i, (fi, fo) in enumerate(LAYER_DIMS(in_dim, out_dim)):
        wp = wp.at[i, :fi, :fo].set(params[f"w{i + 1}"])
        bp = bp.at[i, :fo].set(params[f"b{i + 1}"][0])
    return wp.astype(jnp.bfloat16), bp


def mlp_forward(x, params, *, block_m=2048):
    """x: (B, input_dim) float32; params: dict of transposed weights + biases."""
    B, in_dim = x.shape
    out_dim = params["w4"].shape[1]

    wp, bp = pack_params(params, in_dim, out_dim)

    bm = B if B < block_m else block_m
    grid = (pl.cdiv(B, bm),)

    out_padded = pl.pallas_call(
        functools.partial(mlp_kernel, in_dim=in_dim),
        out_shape=jax.ShapeDtypeStruct((B, PAD), jnp.float32),
        grid=grid,
        in_specs=[
            pl.BlockSpec((bm, in_dim), lambda i: (i, 0)),                 # batch-tiled x
            pl.BlockSpec((NUM_LAYERS, PAD, PAD), lambda i: (0, 0, 0)),    # resident weights
            pl.BlockSpec((NUM_LAYERS, PAD), lambda i: (0, 0)),            # resident biases
        ],
        out_specs=pl.BlockSpec((bm, PAD), lambda i: (i, 0)),              # lane-dense output
        compiler_params=pltpu.CompilerParams(
            dimension_semantics=("parallel",)),
    )(x, wp, bp)

    return out_padded[:, :out_dim]


def init_params(key, input_dim, output_dim):
    """Deterministic init mimicking nn.Linear's U(-1/sqrt(fan_in), 1/sqrt(fan_in)).
    Weights are stored as (in_features, out_features)."""
    params = {}
    for i, (fan_in, fan_out) in enumerate(LAYER_DIMS(input_dim, output_dim), start=1):
        key, kw, kb = jax.random.split(key, 3)
        bound = 1.0 / jnp.sqrt(jnp.float32(fan_in))
        params[f"w{i}"] = jax.random.uniform(
            kw, (fan_in, fan_out), jnp.float32, -bound, bound)
        params[f"b{i}"] = jax.random.uniform(
            kb, (1, fan_out), jnp.float32, -bound, bound)
    return params


def reference_forward_f32(x, params):
    h = jnp.maximum(x @ params["w1"] + params["b1"], 0.0)
    h = jnp.maximum(h @ params["w2"] + params["b2"], 0.0)
    h = jnp.maximum(h @ params["w3"] + params["b3"], 0.0)
    return h @ params["w4"] + params["b4"]


def reference_forward_bf16(x, params):
    """Matches the kernel's numerics: bf16 dot operands, f32 accumulation/elementwise."""
    bdot = lambda a, w: jnp.dot(a.astype(jnp.bfloat16), w.astype(jnp.bfloat16),
                                preferred_element_type=jnp.float32)
    h = jnp.maximum(bdot(x, params["w1"]) + params["b1"], 0.0)
    h = jnp.maximum(bdot(h, params["w2"]) + params["b2"], 0.0)
    h = jnp.maximum(bdot(h, params["w3"]) + params["b3"], 0.0)
    return bdot(h, params["w4"]) + params["b4"]


if __name__ == "__main__":
    input_dim, output_dim = 4, 3   # Iris: 4 features, 3 classes
    batch = 8

    key = jax.random.PRNGKey(0)
    key, kx = jax.random.split(key)
    x = jax.random.normal(kx, (batch, input_dim), dtype=jnp.float32)
    params = init_params(key, input_dim, output_dim)

    out = mlp_forward(x, params)
    out = jax.block_until_ready(out)
    assert out.shape == (batch, output_dim)

    # Numerics-matched check (same bf16 operand rounding, f32 accumulation).
    ref_bf16 = reference_forward_bf16(x, params)
    assert jnp.allclose(out, ref_bf16, atol=1e-3, rtol=1e-3)

    # Semantic sanity check vs. the full-f32 PyTorch-equivalent forward.
    ref_f32 = reference_forward_f32(x, params)
    assert jnp.allclose(out, ref_f32, atol=5e-2, rtol=5e-2)

    print("KERNEL_OK")
</pallas_src>

<mosaic_0001>
module attributes {stable_mosaic.version = 11 : i64} {
  func.func @mlp_kernel(%arg0: i32, %arg1: memref<8x4xf32, #tpu.memory_space<vmem>>, %arg2: memref<4x128x128xbf16, #tpu.memory_space<vmem>>, %arg3: memref<4x128xf32, #tpu.memory_space<vmem>>, %arg4: memref<8x128xf32, #tpu.memory_space<vmem>>) attributes {dimension_semantics = [#tpu.dimension_semantics<parallel>], iteration_bounds = array<i64: 1>, scalar_prefetch = 0 : i64, scratch_operands = 0 : i64, tpu.core_type = #tpu.core_type<tc>, window_params = [{transform_indices = @transform_0, window_bounds = array<i64: 8, 4>}, {pipeline_mode = #tpu.pipeline_mode<synchronous>, transform_indices = @transform_1, window_bounds = array<i64: 4, 128, 128>}, {pipeline_mode = #tpu.pipeline_mode<synchronous>, transform_indices = @transform_2, window_bounds = array<i64: 4, 128>}, {transform_indices = @transform_3, window_bounds = array<i64: 8, 128>}]} {
    %c0 = arith.constant 0 : index
    %c0_0 = arith.constant 0 : index
    %0 = vector.load %arg1[%c0, %c0_0] : memref<8x4xf32, #tpu.memory_space<vmem>>, vector<8x4xf32>
    %c0_1 = arith.constant 0 : index
    %c0_2 = arith.constant 0 : index
    %c0_3 = arith.constant 0 : index
    %1 = vector.load %arg2[%c0_1, %c0_2, %c0_3] : memref<4x128x128xbf16, #tpu.memory_space<vmem>>, vector<1x128x128xbf16>
    %2 = vector.shape_cast %1 : vector<1x128x128xbf16> to vector<128x128xbf16>
    %3 = vector.extract_strided_slice %2 {offsets = [0, 0], sizes = [4, 128], strides = [1, 1]} : vector<128x128xbf16> to vector<4x128xbf16>
    %4 = arith.truncf %0 : vector<8x4xf32> to vector<8x4xbf16>
    %cst = arith.constant dense<0.000000e+00> : vector<8x128xf32>
    %5 = tpu.matmul %4, %3, %cst {dimension_numbers = #tpu.dot_dimension_numbers<[1], [0], [0], [1], [0, 0, 1, 1], [], []>} : vector<8x4xbf16>, vector<4x128xbf16>, vector<8x128xf32> -> vector<8x128xf32>
    %c0_4 = arith.constant 0 : index
    %c0_5 = arith.constant 0 : index
    %6 = vector.load %arg3[%c0_4, %c0_5] : memref<4x128xf32, #tpu.memory_space<vmem>>, vector<1x128xf32>
    %7 = vector.broadcast %6 : vector<1x128xf32> to vector<8x128xf32>
    %8 = arith.addf %5, %7 : vector<8x128xf32>
    %cst_6 = arith.constant 0.000000e+00 : f32
    %9 = vector.broadcast %cst_6 : f32 to vector<8x128xf32>
    %10 = arith.maximumf %8, %9 : vector<8x128xf32>
    %11 = arith.truncf %10 : vector<8x128xf32> to vector<8x128xbf16>
    %c1 = arith.constant 1 : index
    %c0_7 = arith.constant 0 : index
    %c0_8 = arith.constant 0 : index
    %12 = vector.load %arg2[%c1, %c0_7, %c0_8] : memref<4x128x128xbf16, #tpu.memory_space<vmem>>, vector<1x128x128xbf16>
    %13 = vector.shape_cast %12 : vector<1x128x128xbf16> to vector<128x128xbf16>
    %cst_9 = arith.constant dense<0.000000e+00> : vector<8x128xf32>
    %14 = tpu.matmul %11, %13, %cst_9 {dimension_numbers = #tpu.dot_dimension_numbers<[1], [0], [0], [1], [0, 0, 1, 1], [], []>} : vector<8x128xbf16>, vector<128x128xbf16>, vector<8x128xf32> -> vector<8x128xf32>
    %c1_10 = arith.constant 1 : index
    %c0_11 = arith.constant 0 : index
    %15 = vector.load %arg3[%c1_10, %c0_11] : memref<4x128xf32, #tpu.memory_space<vmem>>, vector<1x128xf32>
    %16 = vector.broadcast %15 : vector<1x128xf32> to vector<8x128xf32>
    %17 = arith.addf %14, %16 : vector<8x128xf32>
    %cst_12 = arith.constant 0.000000e+00 : f32
    %18 = vector.broadcast %cst_12 : f32 to vector<8x128xf32>
    %19 = arith.maximumf %17, %18 : vector<8x128xf32>
    %20 = arith.truncf %19 : vector<8x128xf32> to vector<8x128xbf16>
    %c2 = arith.constant 2 : index
    %c0_13 = arith.constant 0 : index
    %c0_14 = arith.constant 0 : index
    %21 = vector.load %arg2[%c2, %c0_13, %c0_14] : memref<4x128x128xbf16, #tpu.memory_space<vmem>>, vector<1x128x128xbf16>
    %22 = vector.shape_cast %21 : vector<1x128x128xbf16> to vector<128x128xbf16>
    %cst_15 = arith.constant dense<0.000000e+00> : vector<8x128xf32>
    %23 = tpu.matmul %20, %22, %cst_15 {dimension_numbers = #tpu.dot_dimension_numbers<[1], [0], [0], [1], [0, 0, 1, 1], [], []>} : vector<8x128xbf16>, vector<128x128xbf16>, vector<8x128xf32> -> vector<8x128xf32>
    %c2_16 = arith.constant 2 : index
    %c0_17 = arith.constant 0 : index
    %24 = vector.load %arg3[%c2_16, %c0_17] : memref<4x128xf32, #tpu.memory_space<vmem>>, vector<1x128xf32>
    %25 = vector.broadcast %24 : vector<1x128xf32> to vector<8x128xf32>
    %26 = arith.addf %23, %25 : vector<8x128xf32>
    %cst_18 = arith.constant 0.000000e+00 : f32
    %27 = vector.broadcast %cst_18 : f32 to vector<8x128xf32>
    %28 = arith.maximumf %26, %27 : vector<8x128xf32>
    %29 = arith.truncf %28 : vector<8x128xf32> to vector<8x128xbf16>
    %c3 = arith.constant 3 : index
    %c0_19 = arith.constant 0 : index
    %c0_20 = arith.constant 0 : index
    %30 = vector.load %arg2[%c3, %c0_19, %c0_20] : memref<4x128x128xbf16, #tpu.memory_space<vmem>>, vector<1x128x128xbf16>
    %31 = vector.shape_cast %30 : vector<1x128x128xbf16> to vector<128x128xbf16>
    %cst_21 = arith.constant dense<0.000000e+00> : vector<8x128xf32>
    %32 = tpu.matmul %29, %31, %cst_21 {dimension_numbers = #tpu.dot_dimension_numbers<[1], [0], [0], [1], [0, 0, 1, 1], [], []>} : vector<8x128xbf16>, vector<128x128xbf16>, vector<8x128xf32> -> vector<8x128xf32>
    %c3_22 = arith.constant 3 : index
    %c0_23 = arith.constant 0 : index
    %33 = vector.load %arg3[%c3_22, %c0_23] : memref<4x128xf32, #tpu.memory_space<vmem>>, vector<1x128xf32>
    %34 = vector.broadcast %33 : vector<1x128xf32> to vector<8x128xf32>
    %35 = arith.addf %32, %34 : vector<8x128xf32>
    %c0_24 = arith.constant 0 : index
    %c0_25 = arith.constant 0 : index
    %36 = vector.load %arg4[%c0_24, %c0_25] : memref<8x128xf32, #tpu.memory_space<vmem>>, vector<8x128xf32>
    tpu.vector_store %arg4[%c0_24, %c0_25], %35 {strides = array<i32>} : memref<8x128xf32, #tpu.memory_space<vmem>>, vector<8x128xf32>,
    return
  }
  func.func @transform_0(%arg0: i32) -> (i32, i32) {
    %c0_i32 = arith.constant 0 : i32
    %c0_i32_0 = arith.constant 0 : i32
    return %arg0, %c0_i32 : i32, i32
  }
  func.func @transform_1(%arg0: i32) -> (i32, i32, i32) {
    %c0_i32 = arith.constant 0 : i32
    %c0_i32_0 = arith.constant 0 : i32
    %c0_i32_1 = arith.constant 0 : i32
    %c0_i32_2 = arith.constant 0 : i32
    return %c0_i32, %c0_i32_0, %c0_i32_1 : i32, i32, i32
  }
  func.func @transform_2(%arg0: i32) -> (i32, i32) {
    %c0_i32 = arith.constant 0 : i32
    %c0_i32_0 = arith.constant 0 : i32
    %c0_i32_1 = arith.constant 0 : i32
    return %c0_i32, %c0_i32_0 : i32, i32
  }
  func.func @transform_3(%arg0: i32) -> (i32, i32) {
    %c0_i32 = arith.constant 0 : i32
    %c0_i32_0 = arith.constant 0 : i32
    return %arg0, %c0_i32 : i32, i32
  }
}

</mosaic_0001>

<bundles_post_ra>
// kernel: tpu_custom_call.1
= control target key start
LH: loop header
LB: loop body
LE: loop exit
PB: predicated region body
PF: predicated region fallthrough
CT: control target
= control target key end

     0   :  { %8 = vsyncpa [#allocation3], 0  ;;  %s738_s0 = inlined_call_operand.vmem [shape: f32[8,4], index: 0, kind: input, shape index: {}]   ;;  %s739_s1 = inlined_call_operand.hbm [shape: bf16[4,128,128], index: 1, kind: input, shape index: {}]   ;;  %s740_s2 = inlined_call_operand.vmem [shape: f32[4,128], index: 2, kind: input, shape index: {}]   ;;  %s741_s3 = inlined_call_operand.hbm [shape: f32[8,128], index: 3, kind: output, shape index: {}]  }
   0x1   :  { %9 = vsyncpa [#allocation4], 0  ;;  %s640_s12 = smov [#allocation2]   ;;  %s592_s16 = scalar_lea.hbm %s739_s1, 4096 }
   0x2   :  { %s17_s13 = sshll.u32 %s640_s12, 4  ;;  %p593_p0 = scmp.ne.s32.totalorder %s739_s1, %s592_s16  ;;  %s18_s13 = int_to_ptr.vmem [resolvable:$true] %s17_s13 }
   0x3   :  { %p596_p1 = scmp.lt.u32.totalorder %s592_s16, %s739_s1 }
   0x5   :  { %p598_p2 = pnand %p596_p1, %p593_p0 }
   0x7   :  { %601 = shalt.err (!%p598_p2)
}
   0x8   :  { %s602_s21 = scalar_lea.vmem %s18_s13, 4096  ;;  %p607_p4 = scmp.lt.s32.totalorder %s18_s13, %s18_s13 }
   0x9   :  { %p603_p3 = scmp.ne.s32.totalorder %s18_s13, %s602_s21  ;;  %p608_p5 = scmp.lt.s32.totalorder %s602_s21, %s602_s21 }
   0xb   :  { %p609_p6 = por %p608_p5, %p607_p4 }
   0xd   :  { %p610_p7 = pnand %p609_p6, %p603_p3 }
   0xf   :  { %613 = shalt.err (!%p610_p7)
}
  0x10   :  { %s641_s22 = smov 64   ;;  %s642_s23 = smov 4  }
  0x11   :  { %23 = dma.hbm_to_vmem [thread:$0]  %s739_s1, 4096, %s18_s13, [#allocation3], %s641_s22, %s641_s22, %s642_s23  }
  0x12   :  { %636 = dma.done.wait [#allocation3], 4096  }
  0x13   :  { %637 = vsyncadd [#allocation3], 4294963200  ;;  %v643_v0 = vmov 0.0   ;;  %vm644_vm0 = vmmov 0   ;;  %vm42_vm1 = vcmask 1041408   ;;  %v30_v2 = vld [vmem:[%s738_s0] sm:$0xff] }
  0x14   :  { %496 = vmatprep.subr.bf16.mxu0 %v643_v0  ;;  %498 = vmatprep.mubr.msk.bf16.mxu0 %vm644_vm0, %v643_v0  ;;  %v31_v1 = vld [vmem:[#allocation2] sm:$0xf]  ;;  %v32_v4 = vpack.c.bf16 %v30_v2, %v30_v2  ;;  %vm38_vm2 = vcmask 31744   ;;  %v569_v6 = vld [vmem:[#allocation2 + $0x48] sm:$0xff]   ;;  %v570_v7 = vld [vmem:[#allocation2 + $0x50] sm:$0xff]   ;;  %s645_s7 = smov [#allocation5]  }
  0x15   :  { %502 = vmatprep.subr.bf16.mxu1 %v643_v0  ;;  %518 = vmatprep.mubr.msk.bf16.mxu1 %vm644_vm0, %v643_v0  ;;  %v44_v3 = vsel %vm42_vm1, %v31_v1, 0  ;;  %v568_v5 = vld [vmem:[#allocation2 + $0x40] sm:$0xff]   ;;  %v571_v8 = vld [vmem:[#allocation2 + $0x58] sm:$0xff]   ;;  %v573_v10 = vld [vmem:[#allocation2 + $0x68] sm:$0xff]   ;;  %s429_s8 = sshll.u32 %s645_s7, 4  ;;  %s430_s8 = int_to_ptr.vmem [resolvable:$true] %s429_s8 }
  0x16   :  { %497 = vmatpush3.bf16.msra.mxu0 %v44_v3  ;;  %503 = vmatpush3.bf16.msra.mxu1 %v568_v5  ;;  %v572_v9 = vld [vmem:[#allocation2 + $0x60] sm:$0xff]   ;;  %v574_v11 = vld [vmem:[#allocation2 + $0x70] sm:$0xff]   ;;  %v575_v12 = vld [vmem:[#allocation2 + $0x78] sm:$0xff]   ;;  %s614_s9 = scalar_lea.vmem %s430_s8, 128  ;;  %p619_p9 = scmp.lt.s32.totalorder %s430_s8, %s430_s8 }
  0x17   :  { %522 = vmatprep.subr.bf16.mxu0 %v643_v0  ;;  %504 = vmatprep.subr.bf16.mxu1 %v643_v0  ;;  %v576_v13 = vld [vmem:[#allocation2 + $0x80] sm:$0xff]   ;;  %v577_v14 = vld [vmem:[#allocation2 + $0x88] sm:$0xff]   ;;  %v578_v15 = vld [vmem:[#allocation2 + $0x90] sm:$0xff]   ;;  %p615_p8 = scmp.ne.s32.totalorder %s430_s8, %s614_s9  ;;  %p620_p10 = scmp.lt.s32.totalorder %s614_s9, %s614_s9 }
  0x18   :  { %v579_v16 = vld [vmem:[#allocation2 + $0x98] sm:$0xff]   ;;  %v580_v17 = vld [vmem:[#allocation2 + $0xa0] sm:$0xff]   ;;  %v581_v18 = vld [vmem:[#allocation2 + $0xa8] sm:$0xff]  }
  0x19   :  { %499 = vmatmul.mubr.msk.bf16.vlgmr.msra.gmra.mrb[0].mxu0 %vm38_vm2, %v32_v4  ;;  %v438_v19 = vld [vmem:[%s740_s2] ss:$0 sm:$0xff]  ;;  %v583_v28 = vld [vmem:[#allocation2 + $0xb8] sm:$0xff]   ;;  %v584_v29 = vld [vmem:[#allocation2 + $0xc0] sm:$0xff]   ;;  %p621_p11 = por %p620_p10, %p619_p9 }
  0x1a   :  { %538 = vmatprep.mubr.msk.bf16.mxu0 %vm644_vm0, %v643_v0  ;;  %505 = vmatpush3.bf16.msra.mxu1 %v569_v6  ;;  %v582_v27 = vld [vmem:[#allocation2 + $0xb0] sm:$0xff]   ;;  %v585_v30 = vld [vmem:[#allocation2 + $0xc8] sm:$0xff]   ;;  %v587_v32 = vld [vmem:[#allocation2 + $0xd8] sm:$0xff]  }
  0x1b   :  { %506 = vmatprep.subr.bf16.mxu1 %v643_v0  ;;  %523 = vmatpush3.bf16.msra.mxu0 %v576_v13  ;;  %v586_v31 = vld [vmem:[#allocation2 + $0xd0] sm:$0xff]   ;;  %v588_v33 = vld [vmem:[#allocation2 + $0xe0] sm:$0xff]   ;;  %v589_v34 = vld [vmem:[#allocation2 + $0xe8] sm:$0xff]   ;;  %p622_p12 = pnand %p621_p11, %p615_p8 }
  0x1c   :  { %524 = vmatprep.subr.bf16.mxu0 %v643_v0  ;;  %v440_v35 = vld [vmem:[%s740_s2 + $0x1] ss:$0 sm:$0xff]  ;;  %v591_v44 = vld [vmem:[#allocation2 + $0xf8] sm:$0xff]   ;;  %v449_v45 = vld [vmem:[%s740_s2 + $0x2] ss:$0 sm:$0xff] }
  0x1d   :  { %v590_v43 = vld [vmem:[#allocation2 + $0xf0] sm:$0xff]  }
  0x1e   :  { %507 = vmatpush3.bf16.msra.mxu1 %v570_v7  ;;  %v458_v53 = vld [vmem:[%s740_s2 + $0x3] ss:$0 sm:$0xff] }
  0x1f   :  { %508 = vmatprep.subr.bf16.mxu1 %v643_v0  ;;  %525 = vmatpush3.bf16.msra.mxu0 %v577_v14 }
  0x20   :  { %526 = vmatprep.subr.bf16.mxu0 %v643_v0 }
  0x22   :  { %509 = vmatpush3.bf16.msra.mxu1 %v571_v8 }
  0x23   :  { %510 = vmatprep.subr.bf16.mxu1 %v643_v0  ;;  %527 = vmatpush3.bf16.msra.mxu0 %v578_v15 }
  0x24   :  { %528 = vmatprep.subr.bf16.mxu0 %v643_v0 }
  0x26   :  { %511 = vmatpush3.bf16.msra.mxu1 %v572_v9 }
  0x27   :  { %512 = vmatprep.subr.bf16.mxu1 %v643_v0  ;;  %529 = vmatpush3.bf16.msra.mxu0 %v579_v16 }
  0x28   :  { %530 = vmatprep.subr.bf16.mxu0 %v643_v0 }
  0x2a   :  { %513 = vmatpush3.bf16.msra.mxu1 %v573_v10 }
  0x2b   :  { %514 = vmatprep.subr.bf16.mxu1 %v643_v0  ;;  %531 = vmatpush3.bf16.msra.mxu0 %v580_v17 }
  0x2c   :  { %532 = vmatprep.subr.bf16.mxu0 %v643_v0 }
  0x2e   :  { %515 = vmatpush3.bf16.msra.mxu1 %v574_v11 }
  0x2f   :  { %516 = vmatprep.subr.bf16.mxu1 %v643_v0  ;;  %533 = vmatpush3.bf16.msra.mxu0 %v581_v18 }
  0x30   :  { %534 = vmatprep.subr.bf16.mxu0 %v643_v0 }
  0x32   :  { %517 = vmatpush3.bf16.msra.mxu1 %v575_v12 }
  0x33   :  { %542 = vmatprep.subr.bf16.mxu1 %v643_v0  ;;  %535 = vmatpush3.bf16.msra.mxu0 %v582_v27 }
  0x34   :  { %536 = vmatprep.subr.bf16.mxu0 %v643_v0 }
  0x37   :  { %537 = vmatpush3.bf16.msra.mxu0 %v583_v28 }
  0xec   :  { %v80_v20 = vpop.f32.mrb[0].mxu0 }
  0xed   :  { %v81_v21 = vadd.f32 %v438_v19, %v80_v20  ;;  %v500_v22 = vpop.f32.mrb[1].mxu0 }
  0xee   :  { %v83_v23 = vpop.f32.mrb[2].mxu0 }
  0xef   :  { %v86_v24 = vmax.f32 %v81_v21, 0.0  ;;  %v501_v25 = vpop.f32.mrb[3].mxu0 }
  0xf1   :  { %v87_v26 = vpack.c.bf16 %v86_v24, %v86_v24 }
  0xf3   :  { %519 = vmatmul.mubr.bf16.vlgmr.msra.gmra.mrb[0].mxu1 %v87_v26 }
  0xf4   :  { %558 = vmatprep.mubr.msk.bf16.mxu1 %vm644_vm0, %v643_v0  ;;  %543 = vmatpush3.bf16.msra.mxu1 %v584_v29 }
  0xf5   :  { %544 = vmatprep.subr.bf16.mxu1 %v643_v0 }
  0xf8   :  { %545 = vmatpush3.bf16.msra.mxu1 %v585_v30 }
  0xf9   :  { %546 = vmatprep.subr.bf16.mxu1 %v643_v0 }
  0xfc   :  { %547 = vmatpush3.bf16.msra.mxu1 %v586_v31 }
  0xfd   :  { %548 = vmatprep.subr.bf16.mxu1 %v643_v0 }
 0x100   :  { %549 = vmatpush3.bf16.msra.mxu1 %v587_v32 }
 0x101   :  { %550 = vmatprep.subr.bf16.mxu1 %v643_v0 }
 0x104   :  { %551 = vmatpush3.bf16.msra.mxu1 %v588_v33 }
 0x105   :  { %552 = vmatprep.subr.bf16.mxu1 %v643_v0 }
 0x108   :  { %553 = vmatpush3.bf16.msra.mxu1 %v589_v34 }
 0x109   :  { %554 = vmatprep.subr.bf16.mxu1 %v643_v0 }
 0x10c   :  { %555 = vmatpush3.bf16.msra.mxu1 %v590_v43 }
 0x10d   :  { %556 = vmatprep.subr.bf16.mxu1 %v643_v0 }
 0x110   :  { %557 = vmatpush3.bf16.msra.mxu1 %v591_v44 }
 0x1c6   :  { %v192_v36 = vpop.f32.mrb[0].mxu1 }
 0x1c7   :  { %v193_v37 = vadd.f32 %v440_v35, %v192_v36  ;;  %v520_v38 = vpop.f32.mrb[1].mxu1 }
 0x1c8   :  { %v195_v39 = vpop.f32.mrb[2].mxu1 }
 0x1c9   :  { %v198_v40 = vmax.f32 %v193_v37, 0.0  ;;  %v521_v41 = vpop.f32.mrb[3].mxu1 }
 0x1cb   :  { %v199_v42 = vpack.c.bf16 %v198_v40, %v198_v40 }
 0x1cd   :  { %539 = vmatmul.mubr.bf16.vlgmr.msra.gmra.mrb[4].mxu0 %v199_v42 }
 0x2a0   :  { %v304_v46 = vpop.f32.mrb[4].mxu0 }
 0x2a1   :  { %v305_v47 = vadd.f32 %v449_v45, %v304_v46  ;;  %v540_v48 = vpop.f32.mrb[5].mxu0 }
 0x2a2   :  { %v307_v49 = vpop.f32.mrb[6].mxu0 }
 0x2a3   :  { %v310_v50 = vmax.f32 %v305_v47, 0.0  ;;  %v541_v51 = vpop.f32.mrb[7].mxu0 }
 0x2a5   :  { %v311_v52 = vpack.c.bf16 %v310_v50, %v310_v50 }
 0x2a7   :  { %559 = vmatmul.mubr.bf16.vlgmr.msra.gmra.mrb[4].mxu1 %v311_v52 }
 0x37a   :  { %v416_v54 = vpop.f32.mrb[4].mxu1 }
 0x37b   :  { %v417_v55 = vadd.f32 %v458_v53, %v416_v54  ;;  %v560_v56 = vpop.f32.mrb[5].mxu1 }
 0x37c   :  { %v419_v57 = vpop.f32.mrb[6].mxu1 }
 0x37d   :  { %422 = vst [vmem:[#allocation5] sm:$0xff] %v417_v55  ;;  %v561_v58 = vpop.f32.mrb[7].mxu1 }
 0x37e   :  { %625 = shalt.err (!%p622_p12)
}
 0x37f   :  { %s626_s2 = scalar_lea.hbm %s741_s3, 128 }
 0x380   :  { %p627_p13 = scmp.ne.s32.totalorder %s741_s3, %s626_s2  ;;  %p630_p0 = scmp.lt.u32.totalorder %s626_s2, %s741_s3 }
 0x382   :  { %p632_p1 = pnand %p630_p0, %p627_p13 }
 0x384   :  { %635 = shalt.err (!%p632_p1)
}
 0x385   :  { %432 = dma.vmem_to_hbm [thread:$0]  %s430_s8, 128, %s741_s3, [#allocation4]  }
 0x386   :  { %638 = dma.done.wait [#allocation4], 128  }
 0x387   :  { %639 = vsyncadd [#allocation4], 4294967168 }
 0x388   :  { %436 = vsyncpa [#allocation3], 1 }
 0x389   :  { %437 = vsyncpa [#allocation4], 1 }

</bundles_post_ra>
